<compile_context>
chip_gen: v5e
topology: v5e:2x2
jax: 0.10.0
libtpu: 0.0.40
codegen_flags: <defaults>
</compile_context>

<pallas_src>
import functools

import jax
import jax.numpy as jnp
from jax.experimental import pallas as pl
from jax.experimental.pallas import tpu as pltpu


def _round_up(x, m):
    return ((x + m - 1) // m) * m


def _decoder_kernel(x_ref, w1_ref, b1_ref, w2_ref, b2_ref, o_ref):
    # layer1: x @ W1 + b1, ReLU  (f32 accumulation on the MXU)
    h = jnp.dot(x_ref[...], w1_ref[...], preferred_element_type=jnp.float32)
    h = jnp.maximum(h + b1_ref[...].astype(jnp.float32), 0.0)
    # dropout(p=0.1) in eval mode == identity
    # For bf16 models, feed the second matmul bf16 operands (MXU peak rate);
    # accumulation stays f32 via preferred_element_type.
    if x_ref.dtype != jnp.float32:
        h = h.astype(x_ref.dtype)
    out = jnp.dot(h, w2_ref[...], preferred_element_type=jnp.float32)
    out = out + b2_ref[...].astype(jnp.float32)
    o_ref[...] = out.astype(o_ref.dtype)


def prepare_decoder_params(w1, b1, w2, b2):
    """Pad parameters ONCE (init-time). Only the hidden dim is padded: it never
    touches HBM as an activation, and zero-padded hidden columns/rows are exact
    through Linear->ReLU->Linear."""
    latent, hidden = w1.shape
    out_dim = w2.shape[1]
    if hidden >= 256:
        hidden_p = _round_up(hidden, 256)   # full-width 256-wide MXU (v6e/v7x)
    else:
        hidden_p = _round_up(hidden, 128)
    dh = hidden_p - hidden
    w1_p = jnp.pad(w1, ((0, 0), (0, dh))) if dh else w1
    b1_p = (jnp.pad(b1, (0, dh)) if dh else b1).reshape(1, hidden_p)
    w2_p = jnp.pad(w2, ((0, dh), (0, 0))) if dh else w2
    b2_p = b2.reshape(1, out_dim)
    return (w1_p, b1_p, w2_p, b2_p)


def _is_v5():
    try:
        kind = jax.devices()[0].device_kind.lower()
    except Exception:
        return False
    return "v5" in kind


def _pick_tile_b(B, min_sub):
    if B <= 64:
        return _round_up(B, min_sub)          # single grid step, no pipeline overhead
    if B <= 256:
        # >= 2 grid steps so a 2-TensorCore chip (v7x) can shard the parallel axis
        return _round_up(-(-B // 2), min_sub)
    # large B: full-height MXU LHS tiles; 128 rows on v5e (spill / 1 vst slot),
    # 256 rows on v6e/v7x
    prefs = (128, 256) if _is_v5() else (256, 128)
    for t in prefs:
        if B % t == 0:
            return t
    # neither divides: pick the tile in [128, 256] minimizing batch padding
    best_t, best_key = None, None
    for t in range(128, 257, min_sub):
        key = (_round_up(B, t) - B, -t)
        if best_key is None or key < best_key:
            best_key, best_t = key, t
    return best_t


def reconstruction_decoder(z, params, *, tile_b=None):
    """z: (B, latent); params = prepare_decoder_params(w1, b1, w2, b2) -> (B, out)."""
    w1_p, b1_p, w2_p, b2_p = params
    B, latent = z.shape
    assert w1_p.shape[0] == latent
    hidden_p = w1_p.shape[1]
    out_dim = w2_p.shape[1]
    dtype = z.dtype

    min_sub = 16 if dtype == jnp.bfloat16 else 8
    if tile_b is None:
        tile_b = _pick_tile_b(B, min_sub)
    tile_b = max(_round_up(tile_b, min_sub), min_sub)

    # Batch padding only when needed (static decision, no-op for even batches).
    B_pad = _round_up(B, tile_b)
    z_p = jnp.pad(z, ((0, B_pad - B), (0, 0))) if B_pad != B else z

    # Explicit scoped-VMEM budget: double-buffered activation tiles + (default
    # double-buffered) resident weights + f32 hidden scratch, 2x headroom,
    # floored at 32 MiB, capped at v7x's 64 MiB physical VMEM.
    isz = jnp.dtype(dtype).itemsize
    weight_bytes = (latent * hidden_p + hidden_p + hidden_p * out_dim + out_dim) * isz
    act_tile_bytes = (tile_b * latent + tile_b * out_dim) * isz
    h_bytes = tile_b * hidden_p * 4
    vmem_limit = int(min(64 << 20,
                         max(32 << 20,
                             2 * (2 * (weight_bytes + act_tile_bytes) + 2 * h_bytes))))

    cost = pl.CostEstimate(
        flops=2 * B_pad * (latent * hidden_p + hidden_p * out_dim),
        transcendentals=0,
        bytes_accessed=isz * (B_pad * latent + B_pad * out_dim) + weight_bytes,
    )

    grid = (B_pad // tile_b,)
    out = pl.pallas_call(
        _decoder_kernel,
        out_shape=jax.ShapeDtypeStruct((B_pad, out_dim), dtype),
        grid_spec=pltpu.PrefetchScalarGridSpec(
            num_scalar_prefetch=0,
            grid=grid,
            in_specs=[
                # activation tile: last dim == full latent extent (no K padding)
                pl.BlockSpec((tile_b, latent), lambda i: (i, 0)),
                # grid-invariant operands (constant index_map -> stay resident)
                pl.BlockSpec((latent, hidden_p), lambda i: (0, 0)),   # W1
                pl.BlockSpec((1, hidden_p), lambda i: (0, 0)),        # b1
                pl.BlockSpec((hidden_p, out_dim), lambda i: (0, 0)),  # W2
                pl.BlockSpec((1, out_dim), lambda i: (0, 0)),         # b2
            ],
            # output last dim == full out_dim extent (no pad+slice HBM round trip)
            out_specs=pl.BlockSpec((tile_b, out_dim), lambda i: (i, 0)),
        ),
        compiler_params=pltpu.CompilerParams(
            dimension_semantics=("parallel",),
            vmem_limit_bytes=vmem_limit,
        ),
        cost_estimate=cost,
    )(z_p, w1_p, b1_p, w2_p, b2_p)

    return out[:B] if B_pad != B else out


if __name__ == "__main__":
    # Small shapes consistent with the module: latent_dim=32, hidden_dim=64,
    # output_dim=48, batch=16.
    batch, latent_dim, hidden_dim, output_dim = 16, 32, 64, 48

    key = jax.random.PRNGKey(0)
    k_z, k_w1, k_b1, k_w2, k_b2 = jax.random.split(key, 5)

    z = jax.random.normal(k_z, (batch, latent_dim), dtype=jnp.float32)
    # deterministic parameter init (PyTorch-ish uniform fan-in scaling)
    lim1 = 1.0 / (latent_dim ** 0.5)
    lim2 = 1.0 / (hidden_dim ** 0.5)
    w1 = jax.random.uniform(k_w1, (latent_dim, hidden_dim), jnp.float32, -lim1, lim1)
    b1 = jax.random.uniform(k_b1, (hidden_dim,), jnp.float32, -lim1, lim1)
    w2 = jax.random.uniform(k_w2, (hidden_dim, output_dim), jnp.float32, -lim2, lim2)
    b2 = jax.random.uniform(k_b2, (output_dim,), jnp.float32, -lim2, lim2)

    # Pad parameters once at init (hoisted out of the per-call path).
    params = prepare_decoder_params(w1, b1, w2, b2)
    params = jax.tree_util.tree_map(jax.block_until_ready, params)

    decode = jax.jit(functools.partial(reconstruction_decoder))
    out = jax.block_until_ready(decode(z, params))

    # reference check (plain JAX)
    ref = jnp.maximum(z @ w1 + b1, 0.0) @ w2 + b2
    assert out.shape == (batch, output_dim)
    assert jnp.allclose(out, ref, atol=1e-5, rtol=1e-5)

    print("KERNEL_OK")
</pallas_src>

<mosaic_0001>
module attributes {stable_mosaic.version = 11 : i64} {
  func.func @_decoder_kernel(%arg0: i32, %arg1: memref<16x32xf32, #tpu.memory_space<vmem>>, %arg2: memref<32x128xf32, #tpu.memory_space<vmem>>, %arg3: memref<1x128xf32, #tpu.memory_space<vmem>>, %arg4: memref<128x48xf32, #tpu.memory_space<vmem>>, %arg5: memref<1x48xf32, #tpu.memory_space<vmem>>, %arg6: memref<16x48xf32, #tpu.memory_space<vmem>>) attributes {dimension_semantics = [#tpu.dimension_semantics<parallel>], iteration_bounds = array<i64: 1>, scalar_prefetch = 0 : i64, scratch_operands = 0 : i64, tpu.core_type = #tpu.core_type<tc>, window_params = [{transform_indices = @transform_0, window_bounds = array<i64: 16, 32>}, {pipeline_mode = #tpu.pipeline_mode<synchronous>, transform_indices = @transform_1, window_bounds = array<i64: 32, 128>}, {pipeline_mode = #tpu.pipeline_mode<synchronous>, transform_indices = @transform_2, window_bounds = array<i64: 1, 128>}, {pipeline_mode = #tpu.pipeline_mode<synchronous>, transform_indices = @transform_3, window_bounds = array<i64: 128, 48>}, {pipeline_mode = #tpu.pipeline_mode<synchronous>, transform_indices = @transform_4, window_bounds = array<i64: 1, 48>}, {transform_indices = @transform_5, window_bounds = array<i64: 16, 48>}]} {
    %c0 = arith.constant 0 : index
    %c0_0 = arith.constant 0 : index
    %0 = vector.load %arg1[%c0, %c0_0] : memref<16x32xf32, #tpu.memory_space<vmem>>, vector<16x32xf32>
    %c0_1 = arith.constant 0 : index
    %c0_2 = arith.constant 0 : index
    %1 = vector.load %arg2[%c0_1, %c0_2] : memref<32x128xf32, #tpu.memory_space<vmem>>, vector<32x128xf32>
    %cst = arith.constant dense<0.000000e+00> : vector<16x128xf32>
    %2 = tpu.matmul %0, %1, %cst {dimension_numbers = #tpu.dot_dimension_numbers<[1], [0], [0], [1], [0, 0, 1, 1], [], []>} : vector<16x32xf32>, vector<32x128xf32>, vector<16x128xf32> -> vector<16x128xf32>
    %c0_3 = arith.constant 0 : index
    %c0_4 = arith.constant 0 : index
    %3 = vector.load %arg3[%c0_3, %c0_4] : memref<1x128xf32, #tpu.memory_space<vmem>>, vector<1x128xf32>
    %4 = vector.broadcast %3 : vector<1x128xf32> to vector<16x128xf32>
    %5 = arith.addf %2, %4 : vector<16x128xf32>
    %cst_5 = arith.constant 0.000000e+00 : f32
    %6 = vector.broadcast %cst_5 : f32 to vector<16x128xf32>
    %7 = arith.maximumf %5, %6 : vector<16x128xf32>
    %c0_6 = arith.constant 0 : index
    %c0_7 = arith.constant 0 : index
    %8 = vector.load %arg4[%c0_6, %c0_7] : memref<128x48xf32, #tpu.memory_space<vmem>>, vector<128x48xf32>
    %cst_8 = arith.constant dense<0.000000e+00> : vector<16x48xf32>
    %9 = tpu.matmul %7, %8, %cst_8 {dimension_numbers = #tpu.dot_dimension_numbers<[1], [0], [0], [1], [0, 0, 1, 1], [], []>} : vector<16x128xf32>, vector<128x48xf32>, vector<16x48xf32> -> vector<16x48xf32>
    %c0_9 = arith.constant 0 : index
    %c0_10 = arith.constant 0 : index
    %10 = vector.load %arg5[%c0_9, %c0_10] : memref<1x48xf32, #tpu.memory_space<vmem>>, vector<1x48xf32>
    %11 = vector.broadcast %10 : vector<1x48xf32> to vector<16x48xf32>
    %12 = arith.addf %9, %11 : vector<16x48xf32>
    %c0_11 = arith.constant 0 : index
    %c0_12 = arith.constant 0 : index
    %13 = vector.load %arg6[%c0_11, %c0_12] : memref<16x48xf32, #tpu.memory_space<vmem>>, vector<16x48xf32>
    tpu.vector_store %arg6[%c0_11, %c0_12], %12 {strides = array<i32>} : memref<16x48xf32, #tpu.memory_space<vmem>>, vector<16x48xf32>,
    return
  }
  func.func @transform_0(%arg0: i32) -> (i32, i32) {
    %c0_i32 = arith.constant 0 : i32
    %c0_i32_0 = arith.constant 0 : i32
    return %arg0, %c0_i32 : i32, i32
  }
  func.func @transform_1(%arg0: i32) -> (i32, i32) {
    %c0_i32 = arith.constant 0 : i32
    %c0_i32_0 = arith.constant 0 : i32
    %c0_i32_1 = arith.constant 0 : i32
    return %c0_i32, %c0_i32_0 : i32, i32
  }
  func.func @transform_2(%arg0: i32) -> (i32, i32) {
    %c0_i32 = arith.constant 0 : i32
    %c0_i32_0 = arith.constant 0 : i32
    %c0_i32_1 = arith.constant 0 : i32
    return %c0_i32, %c0_i32_0 : i32, i32
  }
  func.func @transform_3(%arg0: i32) -> (i32, i32) {
    %c0_i32 = arith.constant 0 : i32
    %c0_i32_0 = arith.constant 0 : i32
    %c0_i32_1 = arith.constant 0 : i32
    return %c0_i32, %c0_i32_0 : i32, i32
  }
  func.func @transform_4(%arg0: i32) -> (i32, i32) {
    %c0_i32 = arith.constant 0 : i32
    %c0_i32_0 = arith.constant 0 : i32
    %c0_i32_1 = arith.constant 0 : i32
    return %c0_i32, %c0_i32_0 : i32, i32
  }
  func.func @transform_5(%arg0: i32) -> (i32, i32) {
    %c0_i32 = arith.constant 0 : i32
    %c0_i32_0 = arith.constant 0 : i32
    return %arg0, %c0_i32 : i32, i32
  }
}

</mosaic_0001>

<bundles_post_ra>
// kernel: reconstruction_decoder.1
= control target key start
LH: loop header
LB: loop body
LE: loop exit
PB: predicated region body
PF: predicated region fallthrough
CT: control target
= control target key end

     0   :  { %vm31_vm0 = vcmask 261120   ;;  %s286_s0 = inlined_call_operand.vmem [shape: f32[16,32], index: 0, kind: input, shape index: {}]   ;;  %s287_s1 = inlined_call_operand.vmem [shape: f32[32,128], index: 1, kind: input, shape index: {}]   ;;  %s288_s2 = inlined_call_operand.vmem [shape: f32[1,128], index: 2, kind: input, shape index: {}]   ;;  %s289_s3 = inlined_call_operand.vmem [shape: f32[128,48], index: 3, kind: input, shape index: {}]   ;;  %s290_s4 = inlined_call_operand.vmem [shape: f32[1,48], index: 4, kind: input, shape index: {}]   ;;  %s291_s5 = inlined_call_operand.hbm [shape: f32[16,48], index: 5, kind: output, shape index: {}]  }
   0x1   :  { %v26_v0 = vld [vmem:[%s287_s1 + $0x18] sm:$0xff]  ;;  %v25_v1 = vld [vmem:[%s287_s1 + $0x10] sm:$0xff]  ;;  %v24_v2 = vld [vmem:[%s287_s1 + $0x8] sm:$0xff] }
   0x2   :  { %50 = vmatpush.msra.mxu0 %v26_v0  ;;  %v78_v3 = vld [vmem:[%s289_s3 + $0x78] sm:$0xff]  ;;  %v77_v4 = vld [vmem:[%s289_s3 + $0x70] sm:$0xff]  ;;  %v23_v5 = vld [vmem:[%s287_s1] sm:$0xff] }
   0x3   :  { %83 = vmatpush.msra.mxu1 %v78_v3  ;;  %v76_v6 = vld [vmem:[%s289_s3 + $0x68] sm:$0xff]  ;;  %129 = vmatpush.msra.mxu2 %v78_v3  ;;  %v21_v7 = vld [vmem:[%s286_s0] sm:$0xff] }
   0x4   :  { %51 = vmatpush.msra.mxu0 %v25_v1  ;;  %v75_v8 = vld [vmem:[%s289_s3 + $0x60] sm:$0xff] }
   0x5   :  { %84 = vmatpush.msra.mxu1 %v77_v4  ;;  %130 = vmatpush.msra.mxu2 %v77_v4 }
   0x6   :  { %52 = vmatpush.msra.mxu0 %v24_v2 }
   0x7   :  { %85 = vmatpush.msra.mxu1 %v76_v6 }
   0x8   :  { %53 = vmatpush.msra.mxu0 %v23_v5 }
   0x9   :  { %10 = vsyncpa [#allocation3], 0  ;;  %127 = vmatmul.msk.f32.vlgmr.msra.gmra.mxu0 %vm31_vm0, %v21_v7  ;;  %v74_v9 = vld [vmem:[%s289_s3 + $0x58] sm:$0xff]  ;;  %131 = vmatpush.msra.mxu2 %v76_v6  ;;  %v73_v10 = vld [vmem:[%s289_s3 + $0x50] sm:$0xff]  ;;  %vm106_vm1 = vcmask 392192   ;;  %s115_s15 = sshll.u32 %s291_s5, 4  ;;  %s116_s15 = int_to_ptr.hbm [resolvable:$true] %s115_s15 }
   0xa   :  { %86 = vmatpush.msra.mxu1 %v75_v8  ;;  %v72_v11 = vld [vmem:[%s289_s3 + $0x48] sm:$0xff]  ;;  %v71_v13 = vld [vmem:[%s289_s3 + $0x40] sm:$0xff]  ;;  %v70_v14 = vld [vmem:[%s289_s3 + $0x38] sm:$0xff]  ;;  %s177_s16 = smov 128   ;;  %s178_s17 = smov 8  }
   0xb   :  { %132 = vmatpush.msra.mxu2 %v75_v8  ;;  %v22_v12 = vld [vmem:[%s286_s0 + $0x8] sm:$0xff]  ;;  %v69_v15 = vld [vmem:[%s289_s3 + $0x30] sm:$0xff]  ;;  %v67_v17 = vld [vmem:[%s289_s3 + $0x20] sm:$0xff] }
   0xc   :  { %87 = vmatpush.msra.mxu1 %v74_v9  ;;  %v68_v16 = vld [vmem:[%s289_s3 + $0x28] sm:$0xff]  ;;  %v66_v18 = vld [vmem:[%s289_s3 + $0x18] sm:$0xff]  ;;  %v65_v19 = vld [vmem:[%s289_s3 + $0x10] sm:$0xff] }
   0xd   :  { %133 = vmatpush.msra.mxu2 %v74_v9  ;;  %v64_v20 = vld [vmem:[%s289_s3 + $0x8] sm:$0xff]  ;;  %v63_v21 = vld [vmem:[%s289_s3] sm:$0xff]  ;;  %s176_s3 = smov [#allocation2]  }
   0xe   :  { %88 = vmatpush.msra.mxu1 %v73_v10  ;;  %v148_v22 = vld [vmem:[%s288_s2] ss:$0 sm:$0xff]  ;;  %s113_s13 = sshll.u32 %s176_s3, 4  ;;  %s114_s13 = int_to_ptr.vmem [resolvable:$true] %s113_s13 }
   0xf   :  { %134 = vmatpush.msra.mxu2 %v73_v10  ;;  %v149_v29 = vld [vmem:[%s290_s4] ss:$0 sm:$0xff] }
  0x10   :  { %89 = vmatpush.msra.mxu1 %v72_v11 }
  0x11   :  { %128 = vmatmul.msk.f32.gmra.mxu0 %vm31_vm0, %v22_v12  ;;  %135 = vmatpush.msra.mxu2 %v72_v11 }
  0x12   :  { %90 = vmatpush.msra.mxu1 %v71_v13 }
  0x13   :  { %136 = vmatpush.msra.mxu2 %v71_v13 }
  0x14   :  { %91 = vmatpush.msra.mxu1 %v70_v14 }
  0x15   :  { %137 = vmatpush.msra.mxu2 %v70_v14 }
  0x16   :  { %92 = vmatpush.msra.mxu1 %v69_v15 }
  0x17   :  { %138 = vmatpush.msra.mxu2 %v69_v15 }
  0x18   :  { %93 = vmatpush.msra.mxu1 %v68_v16 }
  0x19   :  { %139 = vmatpush.msra.mxu2 %v68_v16 }
  0x1a   :  { %94 = vmatpush.msra.mxu1 %v67_v17 }
  0x1b   :  { %140 = vmatpush.msra.mxu2 %v67_v17 }
  0x1c   :  { %95 = vmatpush.msra.mxu1 %v66_v18 }
  0x1d   :  { %141 = vmatpush.msra.mxu2 %v66_v18 }
  0x1e   :  { %96 = vmatpush.msra.mxu1 %v65_v19 }
  0x1f   :  { %142 = vmatpush.msra.mxu2 %v65_v19 }
  0x20   :  { %97 = vmatpush.msra.mxu1 %v64_v20 }
  0x21   :  { %143 = vmatpush.msra.mxu2 %v64_v20 }
  0x22   :  { %98 = vmatpush.msra.mxu1 %v63_v21 }
  0x23   :  { %144 = vmatpush.msra.mxu2 %v63_v21 }
  0x86   :  { %v55_v23 = vpop.f32.mrf.mxu0 }
  0x87   :  { %v56_v24 = vadd.f32 %v148_v22, %v55_v23 }
  0x89   :  { %v61_v25 = vmax.f32 %v56_v24, 0.0 }
  0x8b   :  { %99 = vmatmul.f32.vlgmr.msra.gmra.mxu1 %v61_v25 }
  0x8e   :  { %v58_v26 = vpop.f32.mrf.mxu0 }
  0x8f   :  { %v59_v27 = vadd.f32 %v148_v22, %v58_v26 }
  0x91   :  { %v62_v28 = vmax.f32 %v59_v27, 0.0 }
  0x93   :  { %102 = vmatmul.f32.vlgmr.msra.gmra.mxu2 %v62_v28 }
 0x108   :  { %v100_v30 = vpop.f32.mrf.mxu1 }
 0x109   :  { %v101_v31 = vadd.f32 %v149_v29, %v100_v30 }
 0x10b   :  { %107 = vst.msk [vmem:[#allocation2] sm:$0xff] %vm106_vm1, %v101_v31 }
 0x116   :  { %v103_v32 = vpop.f32.mrf.mxu2 }
 0x117   :  { %v104_v33 = vadd.f32 %v149_v29, %v103_v32 }
 0x119   :  { %108 = vst.msk [vmem:[#allocation2 + $0x8] sm:$0xff] %vm106_vm1, %v104_v33 }
 0x11a   :  { %121 = dma.vmem_to_hbm [thread:$0]  %s114_s13, 256, %s116_s15, [#allocation3], %s177_s16, %s177_s16, %s178_s17  }
 0x11b   :  { %174 = dma.done.wait [#allocation3], 256  }
 0x11c   :  { %175 = vsyncadd [#allocation3], 4294967040 }
 0x11d   :  { %126 = vsyncpa [#allocation3], 1 }

</bundles_post_ra>
